<compile_context>
chip_gen: v6e
topology: v6e:2x2x1
jax: 0.10.0
libtpu: 0.0.40
codegen_flags: <defaults>
</compile_context>

<pallas_src>
import jax
import jax.numpy as jnp
from jax.experimental import pallas as pl
from jax.experimental.pallas import tpu as pltpu

# Logical dims (PyTorch module) and padded kernel dims.
IN_DIM, H1_DIM, H2_DIM, OUT_DIM = 24, 400, 300, 4
IN_P, H1_P, H2_P, OUT_P = 32, 512, 384, 128   # sublane / lane aligned
# Column IN_DIM of the padded input is a constant 1.0 ("bias carrier").
# Row IN_DIM of w1p holds b1 and also writes a 1.0 into column H1_DIM of h1
# (ReLU(1)=1 keeps it alive), which then multiplies the b2 row of w2p, etc.
# -> biases ride the matmuls, no separate bias adds or bias DMAs.


def actor_kernel(x_ref, w1_ref, w2_ref, w3_ref, o_ref):
    # Layer 1: (B,32)bf16 @ (32,512)bf16 -> f32 accum (bias folded in).
    h1 = jnp.dot(x_ref[...], w1_ref[...], preferred_element_type=jnp.float32)
    h1 = jnp.maximum(h1, 0.0)                      # ReLU in f32 (VPU)
    # Layer 2: Linear(400 -> 300) + ReLU (padded 512 -> 384).
    h2 = jnp.dot(h1.astype(jnp.bfloat16), w2_ref[...],
                 preferred_element_type=jnp.float32)
    h2 = jnp.maximum(h2, 0.0)
    # Layer 3: Linear(300 -> 4) + tanh (EUP); lane-dense (B, 128) f32 store.
    h3 = jnp.dot(h2.astype(jnp.bfloat16), w3_ref[...],
                 preferred_element_type=jnp.float32)
    o_ref[...] = jnp.tanh(h3)


def pack_params(w1, b1, w2, b2, w3, b3):
    """One-time packing: zero-pad to aligned shapes, fold biases, cast bf16.

    w* are (in_features, out_features) f32, b* are (out_features,) f32.
    """
    w1p = jnp.zeros((IN_P, H1_P), jnp.float32)
    w1p = w1p.at[:IN_DIM, :H1_DIM].set(w1)
    w1p = w1p.at[IN_DIM, :H1_DIM].set(b1)
    w1p = w1p.at[IN_DIM, H1_DIM].set(1.0)          # propagate the carrier

    w2p = jnp.zeros((H1_P, H2_P), jnp.float32)
    w2p = w2p.at[:H1_DIM, :H2_DIM].set(w2)
    w2p = w2p.at[H1_DIM, :H2_DIM].set(b2)
    w2p = w2p.at[H1_DIM, H2_DIM].set(1.0)

    w3p = jnp.zeros((H2_P, OUT_P), jnp.float32)
    w3p = w3p.at[:H2_DIM, :OUT_DIM].set(w3)
    w3p = w3p.at[H2_DIM, :OUT_DIM].set(b3)

    return (w1p.astype(jnp.bfloat16),
            w2p.astype(jnp.bfloat16),
            w3p.astype(jnp.bfloat16))


def actor_forward(state, w1p, w2p, w3p, *, block_b=512):
    """state: (B, 24) f32. Returns (B, 4) f32 = tanh(l3(relu(l2(relu(l1(x))))))."""
    B = state.shape[0]
    b_pad = max(8, pl.cdiv(B, 8) * 8)              # sublane-align the batch
    if b_pad <= block_b:
        block_b = b_pad                            # single grid step
    else:
        b_pad = pl.cdiv(b_pad, block_b) * block_b
    grid = (b_pad // block_b,)

    # Augmented, padded, bf16 input: [x | 1 | 0...] (cheap wrapper-side op).
    x_pad = jnp.zeros((b_pad, IN_P), jnp.float32)
    x_pad = x_pad.at[:B, :IN_DIM].set(state.astype(jnp.float32))
    x_pad = x_pad.at[:, IN_DIM].set(1.0)           # bias carrier column
    x_pad = x_pad.astype(jnp.bfloat16)

    out_pad = pl.pallas_call(
        actor_kernel,
        out_shape=jax.ShapeDtypeStruct((b_pad, OUT_P), jnp.float32),
        grid_spec=pltpu.PrefetchScalarGridSpec(
            num_scalar_prefetch=0,
            grid=grid,
            in_specs=[
                pl.BlockSpec((block_b, IN_P), lambda i: (i, 0)),
                # Weights: constant block index -> DMA'd once, VMEM-resident.
                pl.BlockSpec((IN_P, H1_P), lambda i: (0, 0)),
                pl.BlockSpec((H1_P, H2_P), lambda i: (0, 0)),
                pl.BlockSpec((H2_P, OUT_P), lambda i: (0, 0)),
            ],
            out_specs=pl.BlockSpec((block_b, OUT_P), lambda i: (i, 0)),
        ),
        compiler_params=pltpu.CompilerParams(
            dimension_semantics=("parallel",)),    # shard batch on v7x megacore
    )(x_pad, w1p, w2p, w3p)

    return out_pad[:B, :OUT_DIM]


def init_params(key):
    """PyTorch nn.Linear default init: U(+-1/sqrt(fan_in)) for W and b."""
    dims = [(IN_DIM, H1_DIM), (H1_DIM, H2_DIM), (H2_DIM, OUT_DIM)]
    params = []
    for fan_in, fan_out in dims:
        key, kw, kb = jax.random.split(key, 3)
        bound = float(1.0 / (fan_in ** 0.5))
        w = jax.random.uniform(kw, (fan_in, fan_out), jnp.float32, -bound, bound)
        b = jax.random.uniform(kb, (fan_out,), jnp.float32, -bound, bound)
        params += [w, b]
    return params


if __name__ == "__main__":
    key = jax.random.PRNGKey(0)
    key, kx = jax.random.split(key)
    B = 64
    state = jax.random.normal(kx, (B, IN_DIM), dtype=jnp.float32)

    w1, b1, w2, b2, w3, b3 = init_params(key)
    w1p, w2p, w3p = pack_params(w1, b1, w2, b2, w3, b3)

    out = actor_forward(state, w1p, w2p, w3p)
    out = jax.block_until_ready(out)

    # Full-precision reference (same math as the PyTorch forward); tolerance
    # loosened because weights/activations are bf16 on the MXU path.
    h1 = jnp.maximum(state @ w1 + b1, 0.0)
    h2 = jnp.maximum(h1 @ w2 + b2, 0.0)
    ref = jnp.tanh(h2 @ w3 + b3)

    assert out.shape == (B, OUT_DIM)
    assert bool(jnp.all(jnp.isfinite(out)))
    assert jnp.allclose(out, ref, atol=2e-2, rtol=0.0), \
        float(jnp.max(jnp.abs(out - ref)))

    print("KERNEL_OK")
</pallas_src>

<mosaic_0001>
module attributes {stable_mosaic.version = 11 : i64} {
  func.func @actor_kernel(%arg0: i32, %arg1: memref<64x32xbf16, #tpu.memory_space<vmem>>, %arg2: memref<32x512xbf16, #tpu.memory_space<vmem>>, %arg3: memref<512x384xbf16, #tpu.memory_space<vmem>>, %arg4: memref<384x128xbf16, #tpu.memory_space<vmem>>, %arg5: memref<64x128xf32, #tpu.memory_space<vmem>>) attributes {dimension_semantics = [#tpu.dimension_semantics<parallel>], iteration_bounds = array<i64: 1>, scalar_prefetch = 0 : i64, scratch_operands = 0 : i64, tpu.core_type = #tpu.core_type<tc>, window_params = [{transform_indices = @transform_0, window_bounds = array<i64: 64, 32>}, {pipeline_mode = #tpu.pipeline_mode<synchronous>, transform_indices = @transform_1, window_bounds = array<i64: 32, 512>}, {pipeline_mode = #tpu.pipeline_mode<synchronous>, transform_indices = @transform_2, window_bounds = array<i64: 512, 384>}, {pipeline_mode = #tpu.pipeline_mode<synchronous>, transform_indices = @transform_3, window_bounds = array<i64: 384, 128>}, {transform_indices = @transform_4, window_bounds = array<i64: 64, 128>}]} {
    %c0 = arith.constant 0 : index
    %c0_0 = arith.constant 0 : index
    %0 = vector.load %arg1[%c0, %c0_0] : memref<64x32xbf16, #tpu.memory_space<vmem>>, vector<64x32xbf16>
    %c0_1 = arith.constant 0 : index
    %c0_2 = arith.constant 0 : index
    %1 = vector.load %arg2[%c0_1, %c0_2] : memref<32x512xbf16, #tpu.memory_space<vmem>>, vector<32x512xbf16>
    %cst = arith.constant dense<0.000000e+00> : vector<64x512xf32>
    %2 = tpu.matmul %0, %1, %cst {dimension_numbers = #tpu.dot_dimension_numbers<[1], [0], [0], [1], [0, 0, 1, 1], [], []>} : vector<64x32xbf16>, vector<32x512xbf16>, vector<64x512xf32> -> vector<64x512xf32>
    %cst_3 = arith.constant 0.000000e+00 : f32
    %3 = vector.broadcast %cst_3 : f32 to vector<64x512xf32>
    %4 = arith.maximumf %2, %3 : vector<64x512xf32>
    %5 = arith.truncf %4 : vector<64x512xf32> to vector<64x512xbf16>
    %c0_4 = arith.constant 0 : index
    %c0_5 = arith.constant 0 : index
    %6 = vector.load %arg3[%c0_4, %c0_5] : memref<512x384xbf16, #tpu.memory_space<vmem>>, vector<512x384xbf16>
    %cst_6 = arith.constant dense<0.000000e+00> : vector<64x384xf32>
    %7 = tpu.matmul %5, %6, %cst_6 {dimension_numbers = #tpu.dot_dimension_numbers<[1], [0], [0], [1], [0, 0, 1, 1], [], []>} : vector<64x512xbf16>, vector<512x384xbf16>, vector<64x384xf32> -> vector<64x384xf32>
    %cst_7 = arith.constant 0.000000e+00 : f32
    %8 = vector.broadcast %cst_7 : f32 to vector<64x384xf32>
    %9 = arith.maximumf %7, %8 : vector<64x384xf32>
    %10 = arith.truncf %9 : vector<64x384xf32> to vector<64x384xbf16>
    %c0_8 = arith.constant 0 : index
    %c0_9 = arith.constant 0 : index
    %11 = vector.load %arg4[%c0_8, %c0_9] : memref<384x128xbf16, #tpu.memory_space<vmem>>, vector<384x128xbf16>
    %cst_10 = arith.constant dense<0.000000e+00> : vector<64x128xf32>
    %12 = tpu.matmul %10, %11, %cst_10 {dimension_numbers = #tpu.dot_dimension_numbers<[1], [0], [0], [1], [0, 0, 1, 1], [], []>} : vector<64x384xbf16>, vector<384x128xbf16>, vector<64x128xf32> -> vector<64x128xf32>
    %13 = math.tanh %12 : vector<64x128xf32>
    %c0_11 = arith.constant 0 : index
    %c0_12 = arith.constant 0 : index
    %14 = vector.load %arg5[%c0_11, %c0_12] : memref<64x128xf32, #tpu.memory_space<vmem>>, vector<64x128xf32>
    tpu.vector_store %arg5[%c0_11, %c0_12], %13 {strides = array<i32>} : memref<64x128xf32, #tpu.memory_space<vmem>>, vector<64x128xf32>,
    return
  }
  func.func @transform_0(%arg0: i32) -> (i32, i32) {
    %c0_i32 = arith.constant 0 : i32
    %c0_i32_0 = arith.constant 0 : i32
    return %arg0, %c0_i32 : i32, i32
  }
  func.func @transform_1(%arg0: i32) -> (i32, i32) {
    %c0_i32 = arith.constant 0 : i32
    %c0_i32_0 = arith.constant 0 : i32
    %c0_i32_1 = arith.constant 0 : i32
    return %c0_i32, %c0_i32_0 : i32, i32
  }
  func.func @transform_2(%arg0: i32) -> (i32, i32) {
    %c0_i32 = arith.constant 0 : i32
    %c0_i32_0 = arith.constant 0 : i32
    %c0_i32_1 = arith.constant 0 : i32
    return %c0_i32, %c0_i32_0 : i32, i32
  }
  func.func @transform_3(%arg0: i32) -> (i32, i32) {
    %c0_i32 = arith.constant 0 : i32
    %c0_i32_0 = arith.constant 0 : i32
    %c0_i32_1 = arith.constant 0 : i32
    return %c0_i32, %c0_i32_0 : i32, i32
  }
  func.func @transform_4(%arg0: i32) -> (i32, i32) {
    %c0_i32 = arith.constant 0 : i32
    %c0_i32_0 = arith.constant 0 : i32
    return %arg0, %c0_i32 : i32, i32
  }
}

</mosaic_0001>

<bundles_post_ra>
// kernel: tpu_custom_call.1
= control target key start
LH: loop header
LB: loop body
LE: loop exit
PB: predicated region body
PF: predicated region fallthrough
CT: control target
= control target key end

     0   :  { %9 = vsyncpa [#allocation3], 0  ;;  %s2356_s0 = inlined_call_operand.vmem [shape: bf16[64,32], index: 0, kind: input, shape index: {}]   ;;  %s2357_s1 = inlined_call_operand.hbm [shape: bf16[32,512], index: 1, kind: input, shape index: {}]   ;;  %s2358_s2 = inlined_call_operand.hbm [shape: bf16[512,384], index: 2, kind: input, shape index: {}]   ;;  %s2359_s3 = inlined_call_operand.hbm [shape: bf16[384,128], index: 3, kind: input, shape index: {}]   ;;  %s2360_s4 = inlined_call_operand.hbm [shape: f32[64,128], index: 4, kind: output, shape index: {}]  }
   0x1   :  { %10 = vsyncpa [#allocation6], 0 }
   0x2   :  { %11 = vsyncpa [#allocation4], 0  ;;  %s2230_s15 = smov [#allocation5]  }
   0x3   :  { %s31_s16 = sshll.u32 %s2230_s15, 4  ;;  %s32_s16 = int_to_ptr.vmem [resolvable:$true] %s31_s16 }
   0x4   :  { %s2152_s17 = scalar_lea.vmem %s32_s16, 12288  ;;  %p2157_p1 = scmp.lt.s32.totalorder %s32_s16, %s32_s16 }
   0x5   :  { %p2153_p0 = scmp.ne.s32.totalorder %s32_s16, %s2152_s17  ;;  %p2158_p2 = scmp.lt.s32.totalorder %s2152_s17, %s2152_s17 }
   0x7   :  { %p2159_p3 = por %p2158_p2, %p2157_p1 }
   0x9   :  { %p2160_p4 = pnand %p2159_p3, %p2153_p0 }
   0xb   :  { %2163 = shalt.err (!%p2160_p4)
}
   0xc   :  { %s2231_s18 = smov 192   ;;  %s2232_s19 = smov 12  }
   0xd   :  { %37 = dma.hbm_to_vmem [thread:$0]  %s2358_s2, 12288, %s32_s16, [#allocation6], %s2231_s18, %s2231_s18, %s2232_s19  }
   0xe   :  { %s2233_s22 = smov [#allocation2]  }
   0xf   :  { %s19_s23 = sshll.u32 %s2233_s22, 4  ;;  %s20_s23 = int_to_ptr.vmem [resolvable:$true] %s19_s23 }
  0x10   :  { %s2172_s24 = scalar_lea.vmem %s20_s23, 1024  ;;  %p2177_p6 = scmp.lt.s32.totalorder %s20_s23, %s20_s23 }
  0x11   :  { %p2173_p5 = scmp.ne.s32.totalorder %s20_s23, %s2172_s24  ;;  %p2178_p7 = scmp.lt.s32.totalorder %s2172_s24, %s2172_s24 }
  0x13   :  { %p2179_p8 = por %p2178_p7, %p2177_p6 }
  0x15   :  { %p2180_p9 = pnand %p2179_p8, %p2173_p5 }
  0x17   :  { %2183 = shalt.err (!%p2180_p9)
}
  0x18   :  { %s2234_s25 = smov 256   ;;  %s2235_s26 = smov 16  }
  0x19   :  { %25 = dma.hbm_to_vmem [thread:$0]  %s2357_s1, 1024, %s20_s23, [#allocation3], %s2234_s25, %s2234_s25, %s2235_s26  }
  0x1a   :  { %s2236_s29 = smov [#allocation7]  }
  0x1b   :  { %s43_s30 = sshll.u32 %s2236_s29, 4  ;;  %s44_s30 = int_to_ptr.vmem [resolvable:$true] %s43_s30 }
  0x1c   :  { %s2192_s2 = scalar_lea.vmem %s44_s30, 3072  ;;  %p2197_p11 = scmp.lt.s32.totalorder %s44_s30, %s44_s30 }
  0x1d   :  { %p2193_p10 = scmp.ne.s32.totalorder %s44_s30, %s2192_s2  ;;  %p2198_p12 = scmp.lt.s32.totalorder %s2192_s2, %s2192_s2 }
  0x1f   :  { %p2199_p13 = por %p2198_p12, %p2197_p11 }
  0x21   :  { %p2200_p0 = pnand %p2199_p13, %p2193_p10 }
  0x23   :  { %2203 = shalt.err (!%p2200_p0)
}
  0x24   :  { %s2237_s5 = smov 64   ;;  %s2238_s6 = smov 4  }
  0x25   :  { %49 = dma.hbm_to_vmem [thread:$0]  %s2359_s3, 3072, %s44_s30, [#allocation6], %s2237_s5, %s2237_s5, %s2238_s6  }
  0x26   :  { %2224 = dma.done.wait [#allocation3], 1024  }
  0x27   :  { %2225 = vsyncadd [#allocation3], 4294966272 }
  0x28   :  { %2226 = dma.done.wait [#allocation6], 15360  }
  0x29   :  { %2227 = vsyncadd [#allocation6], 4294951936  ;;  %v2239_v0 = vmov 0   ;;  %v1960_v1 = vld [vmem:[#allocation2 + $0x24] ss:$16 sps:$4 sm:$0xff]   ;;  %vm136_vm0 = vcmask 261120  }
  0x2a   :  { %181 = vmatprep.mubr.bf16.mxu0 %v2239_v0  ;;  %254 = vmatprep.mubr.bf16.mxu1 %v2239_v0  ;;  %v1962_v2 = vld [vmem:[#allocation2 + $0x2c] ss:$16 sps:$4 sm:$0xff]   ;;  %v1964_v3 = vld [vmem:[#allocation2 + $0x20] ss:$16 sps:$4 sm:$0xff]   ;;  %v1965_v4 = vld [vmem:[#allocation2 + $0x28] ss:$16 sps:$4 sm:$0xff]  }
  0x2b   :  { %161 = vmatprep.subr.bf16.mxu0 %v1960_v1  ;;  %234 = vmatprep.subr.bf16.mxu1 %v1962_v2  ;;  %v1966_v5 = vld [vmem:[#allocation2 + $0x4] ss:$16 sps:$4 sm:$0xff]   ;;  %v1968_v6 = vld [vmem:[#allocation2 + $0xc] ss:$16 sps:$4 sm:$0xff]   ;;  %v1970_v7 = vld [vmem:[#allocation2] ss:$16 sps:$4 sm:$0xff]  }
  0x2c   :  { %162 = vmatpush1.bf16.msra.mxu0 %v1964_v3  ;;  %235 = vmatpush1.bf16.msra.mxu1 %v1965_v4  ;;  %v1971_v8 = vld [vmem:[#allocation2 + $0x8] ss:$16 sps:$4 sm:$0xff]   ;;  %v1972_v9 = vld [vmem:[%s2356_s0] sm:$0xff]   ;;  %v1982_v14 = vld [vmem:[#allocation5 + $0x90] ss:$12 sps:$4 sm:$0xff]  }
  0x2d   :  { %163 = vmatprep.subr.bf16.mxu0 %v1966_v5  ;;  %236 = vmatprep.subr.bf16.mxu1 %v1968_v6  ;;  %v1976_v10 = vld [vmem:[#allocation5 + $0xa8] ss:$12 sps:$4 sm:$0xff]   ;;  %v1978_v11 = vld [vmem:[#allocation5 + $0xac] ss:$12 sps:$4 sm:$0xff]   ;;  %v1985_v16 = vld [vmem:[#allocation5 + $0x210] ss:$12 sps:$4 sm:$0xff]  }
  0x2e   :  { %v1979_v12 = vld [vmem:[#allocation5 + $0x228] ss:$12 sps:$4 sm:$0xff]   ;;  %v1981_v13 = vld [vmem:[#allocation5 + $0x22c] ss:$12 sps:$4 sm:$0xff]   ;;  %v1996_v23 = vld [vmem:[#allocation5 + $0x64] ss:$12 sps:$4 sm:$0xff]  }
  0x2f   :  { %v1984_v15 = vld [vmem:[#allocation5 + $0x94] ss:$12 sps:$4 sm:$0xff]   ;;  %v1973_v18 = vld [vmem:[%s2356_s0 + $0x8] sm:$0xff]   ;;  %v1988_v21 = vld [vmem:[#allocation5 + $0x78] ss:$12 sps:$4 sm:$0xff]  }
  0x30   :  { %164 = vmatpush1.bf16.msra.mxu0 %v1970_v7  ;;  %237 = vmatpush1.bf16.msra.mxu1 %v1971_v8  ;;  %v1987_v17 = vld [vmem:[#allocation5 + $0x214] ss:$12 sps:$4 sm:$0xff]   ;;  %v1990_v19 = vld [vmem:[#allocation5 + $0x7c] ss:$12 sps:$4 sm:$0xff]   ;;  %v1991_v22 = vld [vmem:[#allocation5 + $0x1f8] ss:$12 sps:$4 sm:$0xff]  }
  0x31   :  { %983 = vmatprep.subr.bf16.mxu0 %v1978_v11  ;;  %1056 = vmatprep.subr.bf16.mxu1 %v1981_v13  ;;  %v1993_v20 = vld [vmem:[#allocation5 + $0x1fc] ss:$12 sps:$4 sm:$0xff]   ;;  %v1999_v24 = vld [vmem:[#allocation5 + $0x1e4] ss:$12 sps:$4 sm:$0xff]   ;;  %v1994_v25 = vld [vmem:[#allocation5 + $0x60] ss:$12 sps:$4 sm:$0xff]  }
  0x32   :  { %v1997_v26 = vld [vmem:[#allocation5 + $0x1e0] ss:$12 sps:$4 sm:$0xff]   ;;  %v1974_v27 = vld [vmem:[%s2356_s0 + $0x10] sm:$0xff]   ;;  %v1975_v36 = vld [vmem:[%s2356_s0 + $0x18] sm:$0xff]   ;;  %s2240_s0 = smov [#allocation8]  }
  0x33   :  { %1663 = vmatmul.mubr.msk.bf16.vlgmr.msra.gmra.mxu0 %vm136_vm0, %v1972_v9  ;;  %1667 = vmatmul.mubr.msk.bf16.vlgmr.msra.gmra.mxu1 %vm136_vm0, %v1972_v9  ;;  %v2002_v28 = vld [vmem:[#allocation5 + $0x4c] ss:$12 sps:$4 sm:$0xff]   ;;  %v2000_v30 = vld [vmem:[#allocation5 + $0x48] ss:$12 sps:$4 sm:$0xff]   ;;  %v2006_v34 = vld [vmem:[#allocation5 + $0x30] ss:$12 sps:$4 sm:$0xff]  }
  0x34   :  { %191 = vmatprep.mubr.bf16.mxu0 %v2239_v0  ;;  %264 = vmatprep.mubr.bf16.mxu1 %v2239_v0  ;;  %v2005_v29 = vld [vmem:[#allocation5 + $0x1cc] ss:$12 sps:$4 sm:$0xff]   ;;  %v2003_v31 = vld [vmem:[#allocation5 + $0x1c8] ss:$12 sps:$4 sm:$0xff]   ;;  %v2009_v35 = vld [vmem:[#allocation5 + $0x1b0] ss:$12 sps:$4 sm:$0xff]  }
  0x35   :  { %984 = vmatpush1.bf16.msra.mxu0 %v1976_v10  ;;  %1057 = vmatpush1.bf16.msra.mxu1 %v1979_v12  ;;  %v2008_v32 = vld [vmem:[#allocation5 + $0x34] ss:$12 sps:$4 sm:$0xff]   ;;  %v2014_v37 = vld [vmem:[#allocation5 + $0x1c] ss:$12 sps:$4 sm:$0xff]   ;;  %v2012_v39 = vld [vmem:[#allocation5 + $0x18] ss:$12 sps:$4 sm:$0xff]  }
  0x36   :  { %985 = vmatprep.subr.bf16.mxu0 %v1984_v15  ;;  %1058 = vmatprep.subr.bf16.mxu1 %v1987_v17  ;;  %v2011_v33 = vld [vmem:[#allocation5 + $0x1b4] ss:$12 sps:$4 sm:$0xff]   ;;  %v2017_v38 = vld [vmem:[#allocation5 + $0x19c] ss:$12 sps:$4 sm:$0xff]   ;;  %v2015_v40 = vld [vmem:[#allocation5 + $0x198] ss:$12 sps:$4 sm:$0xff]  }
  0x37   :  { %v2020_v41 = vld [vmem:[#allocation5 + $0x4] ss:$12 sps:$4 sm:$0xff]   ;;  %v2018_v43 = vld [vmem:[#allocation5] ss:$12 sps:$4 sm:$0xff]   ;;  %v2024_v47 = vld [vmem:[#allocation5 + $0x168] ss:$12 sps:$4 sm:$0xff]  }
  0x38   :  { %v2023_v42 = vld [vmem:[#allocation5 + $0x184] ss:$12 sps:$4 sm:$0xff]   ;;  %v2021_v44 = vld [vmem:[#allocation5 + $0x180] ss:$12 sps:$4 sm:$0xff]   ;;  %v2027_v48 = vld [vmem:[#allocation5 + $0x2e8] ss:$12 sps:$4 sm:$0xff]  }
  0x39   :  { %986 = vmatpush1.bf16.msra.mxu0 %v1982_v14  ;;  %1059 = vmatpush1.bf16.msra.mxu1 %v1985_v16  ;;  %v2026_v45 = vld [vmem:[#allocation5 + $0x16c] ss:$12 sps:$4 sm:$0xff]   ;;  %v2032_v49 = vld [vmem:[#allocation5 + $0x154] ss:$12 sps:$4 sm:$0xff]   ;;  %v2030_v51 = vld [vmem:[#allocation5 + $0x150] ss:$12 sps:$4 sm:$0xff]  }
  0x3a   :  { %987 = vmatprep.subr.bf16.mxu0 %v1990_v19  ;;  %1060 = vmatprep.subr.bf16.mxu1 %v1993_v20  ;;  %v2029_v46 = vld [vmem:[#allocation5 + $0x2ec] ss:$12 sps:$4 sm:$0xff]   ;;  %v2035_v50 = vld [vmem:[#allocation5 + $0x2d4] ss:$12 sps:$4 sm:$0xff]   ;;  %v2033_v52 = vld [vmem:[#allocation5 + $0x2d0] ss:$12 sps:$4 sm:$0xff]  }
  0x3b   :  { %1664 = vmatmul.mubr.msk.bf16.gmra.mxu0 %vm136_vm0, %v1973_v18  ;;  %1668 = vmatmul.mubr.msk.bf16.gmra.mxu1 %vm136_vm0, %v1973_v18  ;;  %v2038_v53 = vld [vmem:[#allocation5 + $0x13c] ss:$12 sps:$4 sm:$0xff]   ;;  %v2036_v55 = vld [vmem:[#allocation5 + $0x138] ss:$12 sps:$4 sm:$0xff]   ;;  %v2042_v59 = vld [vmem:[#allocation5 + $0x120] ss:$12 sps:$4 sm:$0xff]  }
  0x3c   :  { %201 = vmatprep.mubr.bf16.mxu0 %v2239_v0  ;;  %274 = vmatprep.mubr.bf16.mxu1 %v2239_v0  ;;  %v2041_v54 = vld [vmem:[#allocation5 + $0x2bc] ss:$12 sps:$4 sm:$0xff]   ;;  %v2039_v56 = vld [vmem:[#allocation5 + $0x2b8] ss:$12 sps:$4 sm:$0xff]   ;;  %v2045_v60 = vld [vmem:[#allocation5 + $0x2a0] ss:$12 sps:$4 sm:$0xff]  }
  0x3d   :  { %988 = vmatpush1.bf16.msra.mxu0 %v1988_v21  ;;  %1061 = vmatpush1.bf16.msra.mxu1 %v1991_v22  ;;  %v2044_v57 = vld [vmem:[#allocation5 + $0x124] ss:$12 sps:$4 sm:$0xff]   ;;  %v2050_v61 = vld [vmem:[#allocation5 + $0x10c] ss:$12 sps:$4 sm:$0xff]   ;;  %v2048_v63 = vld [vmem:[#allocation5 + $0x108] ss:$12 sps:$4 sm:$0xff]  }
  0x3e   :  { %989 = vmatprep.subr.bf16.mxu0 %v1996_v23  ;;  %1062 = vmatprep.subr.bf16.mxu1 %v1999_v24  ;;  %v2047_v58 = vld [vmem:[#allocation5 + $0x2a4] ss:$12 sps:$4 sm:$0xff]   ;;  %v2053_v62 = vld [vmem:[#allocation5 + $0x28c] ss:$12 sps:$4 sm:$0xff]   ;;  %v2056_v1 = vld [vmem:[#allocation5 + $0xf4] ss:$12 sps:$4 sm:$0xff]  }
  0x3f   :  { %v2059_v2 = vld [vmem:[#allocation5 + $0x274] ss:$12 sps:$4 sm:$0xff]   ;;  %v2054_v3 = vld [vmem:[#allocation5 + $0xf0] ss:$12 sps:$4 sm:$0xff]   ;;  %v2060_v7 = vld [vmem:[#allocation5 + $0xd8] ss:$12 sps:$4 sm:$0xff]  }
  0x40   :  { %v2057_v4 = vld [vmem:[#allocation5 + $0x270] ss:$12 sps:$4 sm:$0xff]   ;;  %v2063_v8 = vld [vmem:[#allocation5 + $0x258] ss:$12 sps:$4 sm:$0xff]   ;;  %v2066_v11 = vld [vmem:[#allocation5 + $0xc0] ss:$12 sps:$4 sm:$0xff]  }
  0x41   :  { %990 = vmatpush1.bf16.msra.mxu0 %v1994_v25  ;;  %1063 = vmatpush1.bf16.msra.mxu1 %v1997_v26  ;;  %v2062_v5 = vld [vmem:[#allocation5 + $0xdc] ss:$12 sps:$4 sm:$0xff]   ;;  %v2068_v9 = vld [vmem:[#allocation5 + $0xc4] ss:$12 sps:$4 sm:$0xff]   ;;  %v2069_v12 = vld [vmem:[#allocation5 + $0x240] ss:$12 sps:$4 sm:$0xff]  }
  0x42   :  { %991 = vmatprep.subr.bf16.mxu0 %v2002_v28  ;;  %1064 = vmatprep.subr.bf16.mxu1 %v2005_v29  ;;  %v2065_v6 = vld [vmem:[#allocation5 + $0x25c] ss:$12 sps:$4 sm:$0xff]   ;;  %v2071_v10 = vld [vmem:[#allocation5 + $0x244] ss:$12 sps:$4 sm:$0xff]   ;;  %s1638_s15 = sshll.u32 %s2240_s0, 4  ;;  %s1639_s15 = int_to_ptr.vmem [resolvable:$true] %s1638_s15 }
  0x43   :  { %1665 = vmatmul.mubr.msk.bf16.gmra.mxu0 %vm136_vm0, %v1974_v27  ;;  %1669 = vmatmul.mubr.msk.bf16.gmra.mxu1 %vm136_vm0, %v1974_v27  ;;  %v2072_v13 = vld [vmem:[#allocation5 + $0x170] ss:$12 sps:$4 sm:$0xff]   ;;  %s2204_s16 = scalar_lea.vmem %s1639_s15, 1024  ;;  %p2209_p2 = scmp.lt.s32.totalorder %s1639_s15, %s1639_s15 }
  0x44   :  { %211 = vmatprep.mubr.bf16.mxu0 %v2239_v0  ;;  %284 = vmatprep.mubr.bf16.mxu1 %v2239_v0  ;;  %v2051_v0 = vld [vmem:[#allocation5 + $0x288] ss:$12 sps:$4 sm:$0xff]   ;;  %v2073_v14 = vld [vmem:[#allocation5 + $0x2f0] ss:$12 sps:$4 sm:$0xff]   ;;  %p2205_p1 = scmp.ne.s32.totalorder %s1639_s15, %s2204_s16  ;;  %p2210_p3 = scmp.lt.s32.totalorder %s2204_s16, %s2204_s16 }
  0x45   :  { %992 = vmatpush1.bf16.msra.mxu0 %v2000_v30  ;;  %1065 = vmatpush1.bf16.msra.mxu1 %v2003_v31 }
  0x46   :  { %993 = vmatprep.subr.bf16.mxu0 %v2008_v32  ;;  %1066 = vmatprep.subr.bf16.mxu1 %v2011_v33  ;;  %p2211_p4 = por %p2210_p3, %p2209_p2 }
  0x48   :  { %p2212_p5 = pnand %p2211_p4, %p2205_p1 }
  0x49   :  { %994 = vmatpush1.bf16.msra.mxu0 %v2006_v34  ;;  %1067 = vmatpush1.bf16.msra.mxu1 %v2009_v35  ;;  %v2074_v35 = vld [vmem:[#allocation5 + $0xb0] ss:$12 sps:$4 sm:$0xff]  }
  0x4a   :  { %995 = vmatprep.subr.bf16.mxu0 %v2014_v37  ;;  %1068 = vmatprep.subr.bf16.mxu1 %v2017_v38 }
  0x4b   :  { %1666 = vmatmul.mubr.msk.bf16.gmra.mxu0 %vm136_vm0, %v1975_v36  ;;  %1670 = vmatmul.mubr.msk.bf16.gmra.mxu1 %vm136_vm0, %v1975_v36  ;;  %v2075_v36 = vld [vmem:[#allocation5 + $0x230] ss:$12 sps:$4 sm:$0xff]  }
  0x4d   :  { %996 = vmatpush1.bf16.msra.mxu0 %v2012_v39  ;;  %1069 = vmatpush1.bf16.msra.mxu1 %v2015_v40 }
  0x4e   :  { %997 = vmatprep.subr.bf16.mxu0 %v2020_v41  ;;  %1070 = vmatprep.subr.bf16.mxu1 %v2023_v42  ;;  %v2076_v41 = vld [vmem:[#allocation5 + $0x158] ss:$12 sps:$4 sm:$0xff]  }
  0x4f   :  { %v2077_v42 = vld [vmem:[#allocation5 + $0x2d8] ss:$12 sps:$4 sm:$0xff]  }
  0x51   :  { %998 = vmatpush1.bf16.msra.mxu0 %v2018_v43  ;;  %1071 = vmatpush1.bf16.msra.mxu1 %v2021_v44 }
  0x52   :  { %999 = vmatprep.subr.bf16.mxu0 %v2026_v45  ;;  %1072 = vmatprep.subr.bf16.mxu1 %v2029_v46  ;;  %v2078_v45 = vld [vmem:[#allocation5 + $0x98] ss:$12 sps:$4 sm:$0xff]  }
  0x53   :  { %v2079_v46 = vld [vmem:[#allocation5 + $0x218] ss:$12 sps:$4 sm:$0xff]  }
  0x55   :  { %1000 = vmatpush2.bf16.msra.mxu0 %v2024_v47  ;;  %1073 = vmatpush2.bf16.msra.mxu1 %v2027_v48 }
  0x56   :  { %1001 = vmatprep.subr.bf16.mxu0 %v2032_v49  ;;  %1074 = vmatprep.subr.bf16.mxu1 %v2035_v50 }
  0x59   :  { %1002 = vmatpush2.bf16.msra.mxu0 %v2030_v51  ;;  %1075 = vmatpush2.bf16.msra.mxu1 %v2033_v52  ;;  %v2080_v51 = vld [vmem:[#allocation5 + $0x140] ss:$12 sps:$4 sm:$0xff]  }
  0x5a   :  { %1003 = vmatprep.subr.bf16.mxu0 %v2038_v53  ;;  %1076 = vmatprep.subr.bf16.mxu1 %v2041_v54  ;;  %v2081_v52 = vld [vmem:[#allocation5 + $0x2c0] ss:$12 sps:$4 sm:$0xff]  }
  0x5d   :  { %1004 = vmatpush2.bf16.msra.mxu0 %v2036_v55  ;;  %1077 = vmatpush2.bf16.msra.mxu1 %v2039_v56 }
  0x5e   :  { %1005 = vmatprep.subr.bf16.mxu0 %v2044_v57  ;;  %1078 = vmatprep.subr.bf16.mxu1 %v2047_v58 }
  0x61   :  { %1006 = vmatpush2.bf16.msra.mxu0 %v2042_v59  ;;  %1079 = vmatpush2.bf16.msra.mxu1 %v2045_v60 }
  0x62   :  { %1007 = vmatprep.subr.bf16.mxu0 %v2050_v61  ;;  %1080 = vmatprep.subr.bf16.mxu1 %v2053_v62 }
  0x65   :  { %1008 = vmatpush2.bf16.msra.mxu0 %v2048_v63  ;;  %1081 = vmatpush2.bf16.msra.mxu1 %v2051_v0  ;;  %v2082_v63 = vld [vmem:[#allocation5 + $0x80] ss:$12 sps:$4 sm:$0xff]  }
  0x66   :  { %1009 = vmatprep.subr.bf16.mxu0 %v2056_v1  ;;  %1082 = vmatprep.subr.bf16.mxu1 %v2059_v2  ;;  %v2083_v0 = vld [vmem:[#allocation5 + $0x200] ss:$12 sps:$4 sm:$0xff]  }
  0x69   :  { %1010 = vmatpush2.bf16.msra.mxu0 %v2054_v3  ;;  %1083 = vmatpush2.bf16.msra.mxu1 %v2057_v4 }
  0x6a   :  { %1011 = vmatprep.subr.bf16.mxu0 %v2062_v5  ;;  %1084 = vmatprep.subr.bf16.mxu1 %v2065_v6  ;;  %v2084_v5 = vld [vmem:[#allocation5 + $0x128] ss:$12 sps:$4 sm:$0xff]  }
  0x6b   :  { %v2085_v6 = vld [vmem:[#allocation5 + $0x2a8] ss:$12 sps:$4 sm:$0xff]  }
  0x6d   :  { %1012 = vmatpush2.bf16.msra.mxu0 %v2060_v7  ;;  %1085 = vmatpush2.bf16.msra.mxu1 %v2063_v8 }
  0x6e   :  { %1013 = vmatprep.subr.bf16.mxu0 %v2068_v9  ;;  %1086 = vmatprep.subr.bf16.mxu1 %v2071_v10  ;;  %v2086_v9 = vld [vmem:[#allocation5 + $0x68] ss:$12 sps:$4 sm:$0xff]  }
  0x6f   :  { %v2087_v10 = vld [vmem:[#allocation5 + $0x1e8] ss:$12 sps:$4 sm:$0xff]  }
  0x71   :  { %1014 = vmatpush2.bf16.msra.mxu0 %v2066_v11  ;;  %1087 = vmatpush2.bf16.msra.mxu1 %v2069_v12 }
  0x72   :  { %1791 = vmatprep.subr.bf16.mxu0 %v2072_v13  ;;  %1831 = vmatprep.subr.bf16.mxu1 %v2073_v14 }
  0xf3   :  { %v183_v15 = vpop.f32.mrf.mxu0  ;;  %v256_v16 = vpop.f32.mrf.mxu1 }
  0xf4   :  { %v295_v29 = vmax.f32 %v183_v15, 0.0  ;;  %v297_v30 = vmax.f32 %v256_v16, 0.0  ;;  %v2088_v15 = vld [vmem:[#allocation5 + $0x110] ss:$12 sps:$4 sm:$0xff]  }
  0xf5   :  { %v185_v17 = vpop.f32.mrf.mxu0  ;;  %v258_v18 = vpop.f32.mrf.mxu1  ;;  %v2089_v16 = vld [vmem:[#allocation5 + $0x290] ss:$12 sps:$4 sm:$0xff]  }
  0xf6   :  { %v296_v25 = vmax.f32 %v185_v17, 0.0  ;;  %v298_v26 = vmax.f32 %v258_v18, 0.0 }
  0xf7   :  { %v187_v19 = vpop.f32.mrf.mxu0  ;;  %v260_v20 = vpop.f32.mrf.mxu1 }
  0xf8   :  { %v299_v21 = vmax.f32 %v187_v19, 0.0  ;;  %v301_v22 = vmax.f32 %v260_v20, 0.0 }
  0xf9   :  { %v189_v23 = vpop.f32.mrf.mxu0  ;;  %v262_v24 = vpop.f32.mrf.mxu1 }
  0xfa   :  { %v300_v27 = vmax.f32 %v189_v23, 0.0  ;;  %v302_v28 = vmax.f32 %v262_v24, 0.0  ;;  %v2309_v37 = vpack.c.bf16 %v299_v21, %v295_v29  ;;  %v2311_v38 = vpack.c.bf16 %v301_v22, %v297_v30 }
  0xfb   :  { %v193_v31 = vpop.f32.mrf.mxu0  ;;  %v266_v32 = vpop.f32.mrf.mxu1 }
  0xfc   :  { %v2305_v33 = vpack.c.bf16 %v300_v27, %v296_v25  ;;  %v2307_v34 = vpack.c.bf16 %v302_v28, %v298_v26  ;;  %v303_v57 = vmax.f32 %v193_v31, 0.0  ;;  %v305_v58 = vmax.f32 %v266_v32, 0.0  ;;  %v2090_v27 = vld [vmem:[#allocation5 + $0x50] ss:$12 sps:$4 sm:$0xff]  }
  0xfd   :  { %v195_v39 = vpop.f32.mrf.mxu0  ;;  %v268_v40 = vpop.f32.mrf.mxu1  ;;  %v2091_v28 = vld [vmem:[#allocation5 + $0x1d0] ss:$12 sps:$4 sm:$0xff]  }
  0xfe   :  { %1015 = vmatprep.mubr.bf16.mxu0 %v2305_v33  ;;  %1088 = vmatprep.mubr.bf16.mxu1 %v2307_v34  ;;  %v304_v53 = vmax.f32 %v195_v39, 0.0  ;;  %v306_v54 = vmax.f32 %v268_v40, 0.0 }
  0xff   :  { %v197_v43 = vpop.f32.mrf.mxu0  ;;  %v270_v44 = vpop.f32.mrf.mxu1  ;;  %1016 = vmatmul.mubr.bf16.vlgmr.msra.gmra.mxu0 %v2309_v37  ;;  %1089 = vmatmul.mubr.bf16.vlgmr.msra.gmra.mxu1 %v2311_v38 }
 0x100   :  { %1792 = vmatpush3.bf16.msra.mxu0 %v2074_v35  ;;  %1832 = vmatpush3.bf16.msra.mxu1 %v2075_v36  ;;  %v307_v47 = vmax.f32 %v197_v43, 0.0  ;;  %v309_v48 = vmax.f32 %v270_v44, 0.0  ;;  %v2092_v35 = vld [vmem:[#allocation5 + $0xf8] ss:$12 sps:$4 sm:$0xff]  }
 0x101   :  { %v199_v49 = vpop.f32.mrf.mxu0  ;;  %v272_v50 = vpop.f32.mrf.mxu1  ;;  %1793 = vmatprep.subr.bf16.mxu0 %v2076_v41  ;;  %1833 = vmatprep.subr.bf16.mxu1 %v2077_v42  ;;  %v2093_v36 = vld [vmem:[#allocation5 + $0x278] ss:$12 sps:$4 sm:$0xff]  }
 0x102   :  { %v308_v55 = vmax.f32 %v199_v49, 0.0  ;;  %v310_v56 = vmax.f32 %v272_v50, 0.0  ;;  %v2321_v1 = vpack.c.bf16 %v307_v47, %v303_v57  ;;  %v2323_v2 = vpack.c.bf16 %v309_v48, %v305_v58  ;;  %v2094_v41 = vld [vmem:[#allocation5 + $0x38] ss:$12 sps:$4 sm:$0xff]   ;;  %v2096_v47 = vld [vmem:[#allocation5 + $0xe0] ss:$12 sps:$4 sm:$0xff]  }
 0x103   :  { %v203_v59 = vpop.f32.mrf.mxu0  ;;  %v276_v60 = vpop.f32.mrf.mxu1  ;;  %v2095_v42 = vld [vmem:[#allocation5 + $0x1b8] ss:$12 sps:$4 sm:$0xff]   ;;  %v2097_v48 = vld [vmem:[#allocation5 + $0x260] ss:$12 sps:$4 sm:$0xff]  }
 0x104   :  { %v2317_v61 = vpack.c.bf16 %v308_v55, %v304_v53  ;;  %v2319_v62 = vpack.c.bf16 %v310_v56, %v306_v54  ;;  %1794 = vmatpush3.bf16.msra.mxu0 %v2078_v45  ;;  %1834 = vmatpush3.bf16.msra.mxu1 %v2079_v46  ;;  %v311_v21 = vmax.f32 %v203_v59, 0.0  ;;  %v313_v22 = vmax.f32 %v276_v60, 0.0  ;;  %v2098_v57 = vld [vmem:[#allocation5 + $0x20] ss:$12 sps:$4 sm:$0xff]  }
 0x105   :  { %v205_v3 = vpop.f32.mrf.mxu0  ;;  %v278_v4 = vpop.f32.mrf.mxu1  ;;  %1795 = vmatprep.subr.bf16.mxu0 %v2080_v51  ;;  %1835 = vmatprep.subr.bf16.mxu1 %v2081_v52  ;;  %v2099_v58 = vld [vmem:[#allocation5 + $0x1a0] ss:$12 sps:$4 sm:$0xff]  }
 0x106   :  { %1025 = vmatprep.mubr.bf16.mxu0 %v2317_v61  ;;  %1098 = vmatprep.mubr.bf16.mxu1 %v2319_v62  ;;  %v312_v17 = vmax.f32 %v205_v3, 0.0  ;;  %v314_v18 = vmax.f32 %v278_v4, 0.0  ;;  %v2102_v3 = vld [vmem:[#allocation5 + $0x8] ss:$12 sps:$4 sm:$0xff]  }
 0x107   :  { %v207_v7 = vpop.f32.mrf.mxu0  ;;  %v280_v8 = vpop.f32.mrf.mxu1  ;;  %1026 = vmatmul.mubr.bf16.gmra.mxu0 %v2321_v1  ;;  %1099 = vmatmul.mubr.bf16.gmra.mxu1 %v2323_v2  ;;  %v2103_v4 = vld [vmem:[#allocation5 + $0x188] ss:$12 sps:$4 sm:$0xff]  }
 0x108   :  { %1796 = vmatpush3.bf16.msra.mxu0 %v2082_v63  ;;  %1836 = vmatpush3.bf16.msra.mxu1 %v2083_v0  ;;  %v315_v11 = vmax.f32 %v207_v7, 0.0  ;;  %v317_v12 = vmax.f32 %v280_v8, 0.0  ;;  %v2100_v63 = vld [vmem:[#allocation5 + $0xc8] ss:$12 sps:$4 sm:$0xff]  }
 0x109   :  { %v209_v13 = vpop.f32.mrf.mxu0  ;;  %v282_v14 = vpop.f32.mrf.mxu1  ;;  %1797 = vmatprep.subr.bf16.mxu0 %v2084_v5  ;;  %1837 = vmatprep.subr.bf16.mxu1 %v2085_v6  ;;  %v2101_v0 = vld [vmem:[#allocation5 + $0x248] ss:$12 sps:$4 sm:$0xff]   ;;  %v2104_v5 = vld [vmem:[#allocation7 + $0x78] sm:$0xff]  }
 0x10a   :  { %v316_v19 = vmax.f32 %v209_v13, 0.0  ;;  %v318_v20 = vmax.f32 %v282_v14, 0.0  ;;  %v2333_v29 = vpack.c.bf16 %v315_v11, %v311_v21  ;;  %v2335_v30 = vpack.c.bf16 %v317_v12, %v313_v22  ;;  %v2105_v6 = vld [vmem:[#allocation7 + $0x38] sm:$0xff]   ;;  %v2106_v7 = vld [vmem:[#allocation7 + $0x70] sm:$0xff]   ;;  %v2109_v8 = vld [vmem:[#allocation7 + $0x28] sm:$0xff]  }
 0x10b   :  { %v213_v23 = vpop.f32.mrf.mxu0  ;;  %v286_v24 = vpop.f32.mrf.mxu1  ;;  %v2118_v11 = vld [vmem:[#allocation7 + $0x40] sm:$0xff]   ;;  %v2120_v13 = vld [vmem:[#allocation7 + $0xb8] sm:$0xff]   ;;  %v2121_v14 = vld [vmem:[#allocation7 + $0xb0] sm:$0xff]  }
 0x10c   :  { %v2329_v25 = vpack.c.bf16 %v316_v19, %v312_v17  ;;  %v2331_v26 = vpack.c.bf16 %v318_v20, %v314_v18  ;;  %1798 = vmatpush3.bf16.msra.mxu0 %v2086_v9  ;;  %1838 = vmatpush3.bf16.msra.mxu1 %v2087_v10  ;;  %v319_v53 = vmax.f32 %v213_v23, 0.0  ;;  %v321_v54 = vmax.f32 %v286_v24, 0.0  ;;  %v2110_v9 = vld [vmem:[#allocation7 + $0x60] sm:$0xff]   ;;  %v2117_v10 = vld [vmem:[#allocation7 + $0x8] sm:$0xff]   ;;  %v2124_v17 = vld [vmem:[#allocation7 + $0x98] sm:$0xff]  }
 0x10d   :  { %v215_v31 = vpop.f32.mrf.mxu0  ;;  %v288_v32 = vpop.f32.mrf.mxu1  ;;  %1799 = vmatprep.subr.bf16.mxu0 %v2088_v15  ;;  %1839 = vmatprep.subr.bf16.mxu1 %v2089_v16  ;;  %v2119_v12 = vld [vmem:[#allocation7] sm:$0xff]   ;;  %v2122_v15 = vld [vmem:[#allocation7 + $0xa8] sm:$0xff]   ;;  %v2125_v18 = vld [vmem:[#allocation7 + $0x90] sm:$0xff]  }
 0x10e   :  { %1035 = vmatprep.mubr.bf16.mxu0 %v2329_v25  ;;  %1108 = vmatprep.mubr.bf16.mxu1 %v2331_v26  ;;  %v320_v49 = vmax.f32 %v215_v31, 0.0  ;;  %v322_v50 = vmax.f32 %v288_v32, 0.0  ;;  %v2123_v16 = vld [vmem:[#allocation7 + $0xa0] sm:$0xff]   ;;  %v2126_v19 = vld [vmem:[#allocation7 + $0x88] sm:$0xff]  }
 0x10f   :  { %v217_v39 = vpop.f32.mrf.mxu0  ;;  %v290_v40 = vpop.f32.mrf.mxu1  ;;  %1036 = vmatmul.mubr.bf16.gmra.mxu0 %v2333_v29  ;;  %1109 = vmatmul.mubr.bf16.gmra.mxu1 %v2335_v30  ;;  %v2127_v20 = vld [vmem:[#allocation7 + $0x80] sm:$0xff]  }
 0x110   :  { %1800 = vmatpush3.bf16.msra.mxu0 %v2090_v27  ;;  %1840 = vmatpush3.bf16.msra.mxu1 %v2091_v28  ;;  %v323_v43 = vmax.f32 %v217_v39, 0.0  ;;  %v325_v44 = vmax.f32 %v290_v40, 0.0 }
 0x111   :  { %v219_v45 = vpop.f32.mrf.mxu0  ;;  %v292_v46 = vpop.f32.mrf.mxu1  ;;  %1801 = vmatprep.subr.bf16.mxu0 %v2092_v35  ;;  %1841 = vmatprep.subr.bf16.mxu1 %v2093_v36 }
 0x112   :  { %v324_v51 = vmax.f32 %v219_v45, 0.0  ;;  %v326_v52 = vmax.f32 %v292_v46, 0.0  ;;  %v339_v59 = vpack.c.bf16 %v323_v43, %v319_v53  ;;  %v341_v60 = vpack.c.bf16 %v325_v44, %v321_v54 }
 0x114   :  { %v340_v55 = vpack.c.bf16 %v324_v51, %v320_v49  ;;  %v342_v56 = vpack.c.bf16 %v326_v52, %v322_v50  ;;  %1802 = vmatpush3.bf16.msra.mxu0 %v2094_v41  ;;  %1842 = vmatpush3.bf16.msra.mxu1 %v2095_v42 }
 0x115   :  { %1803 = vmatprep.subr.bf16.mxu0 %v2096_v47  ;;  %1843 = vmatprep.subr.bf16.mxu1 %v2097_v48 }
 0x116   :  { %1045 = vmatprep.mubr.bf16.mxu0 %v340_v55  ;;  %1118 = vmatprep.mubr.bf16.mxu1 %v342_v56 }
 0x117   :  { %1046 = vmatmul.mubr.bf16.gmra.mxu0 %v339_v59  ;;  %1119 = vmatmul.mubr.bf16.gmra.mxu1 %v341_v60 }
 0x118   :  { %1804 = vmatpush3.bf16.msra.mxu0 %v2098_v57  ;;  %1844 = vmatpush3.bf16.msra.mxu1 %v2099_v58 }
 0x119   :  { %1161 = vmatprep.mubr.bf16.mxu0 %v2305_v33  ;;  %1226 = vmatprep.mubr.bf16.mxu1 %v2307_v34  ;;  %v2107_v33 = vld [vmem:[#allocation7 + $0x30] sm:$0xff]   ;;  %v2108_v34 = vld [vmem:[#allocation7 + $0x68] sm:$0xff]  }
 0x11a   :  { %1805 = vmatprep.subr.bf16.mxu0 %v2100_v63  ;;  %1845 = vmatprep.subr.bf16.mxu1 %v2101_v0 }
 0x11c   :  { %1806 = vmatpush3.bf16.msra.mxu0 %v2102_v3  ;;  %1846 = vmatpush3.bf16.msra.mxu1 %v2103_v4 }
 0x11d   :  { %1871 = vmatprep.subr.bf16.mxu0 %v2104_v5  ;;  %1923 = vmatprep.subr.bf16.mxu1 %v2120_v13 }
 0x11f   :  { %1162 = vmatmul.mubr.bf16.vlgmr.msra.gmra.mxu0 %v2309_v37  ;;  %1227 = vmatmul.mubr.bf16.vlgmr.msra.gmra.mxu1 %v2311_v38  ;;  %v2111_v37 = vld [vmem:[#allocation7 + $0x20] sm:$0xff]   ;;  %v2112_v38 = vld [vmem:[#allocation7 + $0x58] sm:$0xff]  }
 0x120   :  { %1169 = vmatprep.mubr.bf16.mxu0 %v2317_v61  ;;  %1234 = vmatprep.mubr.bf16.mxu1 %v2319_v62  ;;  %v2113_v61 = vld [vmem:[#allocation7 + $0x18] sm:$0xff]   ;;  %v2114_v62 = vld [vmem:[#allocation7 + $0x50] sm:$0xff]  }
 0x121   :  { %1872 = vmatpush3.bf16.msra.mxu0 %v2105_v6  ;;  %1924 = vmatpush3.bf16.msra.mxu1 %v2120_v13 }
 0x122   :  { %1873 = vmatprep.subr.bf16.mxu0 %v2106_v7  ;;  %1925 = vmatprep.subr.bf16.mxu1 %v2121_v14 }
 0x125   :  { %1874 = vmatpush3.bf16.msra.mxu0 %v2107_v33  ;;  %1926 = vmatpush3.bf16.msra.mxu1 %v2121_v14 }
 0x126   :  { %1875 = vmatprep.subr.bf16.mxu0 %v2108_v34  ;;  %1927 = vmatprep.subr.bf16.mxu1 %v2122_v15 }
 0x127   :  { %1170 = vmatmul.mubr.bf16.gmra.mxu0 %v2321_v1  ;;  %1235 = vmatmul.mubr.bf16.gmra.mxu1 %v2323_v2  ;;  %v2115_v1 = vld [vmem:[#allocation7 + $0x10] sm:$0xff]   ;;  %v2116_v2 = vld [vmem:[#allocation7 + $0x48] sm:$0xff]  }
 0x128   :  { %1177 = vmatprep.mubr.bf16.mxu0 %v2329_v25  ;;  %1242 = vmatprep.mubr.bf16.mxu1 %v2331_v26 }
 0x129   :  { %1876 = vmatpush3.bf16.msra.mxu0 %v2109_v8  ;;  %1928 = vmatpush3.bf16.msra.mxu1 %v2122_v15 }
 0x12a   :  { %1877 = vmatprep.subr.bf16.mxu0 %v2110_v9  ;;  %1929 = vmatprep.subr.bf16.mxu1 %v2123_v16 }
 0x12d   :  { %1878 = vmatpush3.bf16.msra.mxu0 %v2111_v37  ;;  %1930 = vmatpush3.bf16.msra.mxu1 %v2123_v16 }
 0x12e   :  { %1879 = vmatprep.subr.bf16.mxu0 %v2112_v38  ;;  %1931 = vmatprep.subr.bf16.mxu1 %v2124_v17 }
 0x12f   :  { %1178 = vmatmul.mubr.bf16.gmra.mxu0 %v2333_v29  ;;  %1243 = vmatmul.mubr.bf16.gmra.mxu1 %v2335_v30 }
 0x130   :  { %1185 = vmatprep.mubr.bf16.mxu0 %v340_v55  ;;  %1250 = vmatprep.mubr.bf16.mxu1 %v342_v56 }
 0x131   :  { %1880 = vmatpush3.bf16.msra.mxu0 %v2113_v61  ;;  %1932 = vmatpush3.bf16.msra.mxu1 %v2124_v17 }
 0x132   :  { %1881 = vmatprep.subr.bf16.mxu0 %v2114_v62  ;;  %1933 = vmatprep.subr.bf16.mxu1 %v2125_v18 }
 0x135   :  { %1882 = vmatpush3.bf16.msra.mxu0 %v2115_v1  ;;  %1934 = vmatpush3.bf16.msra.mxu1 %v2125_v18 }
 0x136   :  { %1883 = vmatprep.subr.bf16.mxu0 %v2116_v2  ;;  %1935 = vmatprep.subr.bf16.mxu1 %v2126_v19 }
 0x137   :  { %1186 = vmatmul.mubr.bf16.gmra.mxu0 %v339_v59  ;;  %1251 = vmatmul.mubr.bf16.gmra.mxu1 %v341_v60 }
 0x139   :  { %1884 = vmatpush3.bf16.msra.mxu0 %v2117_v10  ;;  %1936 = vmatpush3.bf16.msra.mxu1 %v2126_v19 }
 0x13a   :  { %1885 = vmatprep.subr.bf16.mxu0 %v2118_v11  ;;  %1937 = vmatprep.subr.bf16.mxu1 %v2127_v20 }
 0x13d   :  { %1886 = vmatpush3.bf16.msra.mxu0 %v2119_v12  ;;  %1938 = vmatpush3.bf16.msra.mxu1 %v2127_v20 }
 0x1bf   :  { %v1017_v21 = vpop.f32.mrf.mxu0  ;;  %v1090_v22 = vpop.f32.mrf.mxu1 }
 0x1c0   :  { %v1091_v29 = vadd.f32 %v1090_v22, %v1017_v21 }
 0x1c1   :  { %v1019_v23 = vpop.f32.mrf.mxu0  ;;  %v1092_v24 = vpop.f32.mrf.mxu1 }
 0x1c2   :  { %v1093_v27 = vadd.f32 %v1092_v24, %v1019_v23  ;;  %v1259_v42 = vmax.f32 %v1091_v29, 0.0 }
 0x1c3   :  { %v1021_v25 = vpop.f32.mrf.mxu0  ;;  %v1094_v26 = vpop.f32.mrf.mxu1 }
 0x1c4   :  { %v1095_v28 = vadd.f32 %v1094_v26, %v1021_v25  ;;  %v1260_v40 = vmax.f32 %v1093_v27, 0.0 }
 0x1c5   :  { %v1023_v30 = vpop.f32.mrf.mxu0  ;;  %v1096_v31 = vpop.f32.mrf.mxu1 }
 0x1c6   :  { %v1097_v32 = vadd.f32 %v1096_v31, %v1023_v30  ;;  %v1262_v35 = vmax.f32 %v1095_v28, 0.0 }
 0x1c7   :  { %v1027_v36 = vpop.f32.mrf.mxu0  ;;  %v1100_v39 = vpop.f32.mrf.mxu1 }
 0x1c8   :  { %v1263_v41 = vmax.f32 %v1097_v32, 0.0  ;;  %v1283_v46 = vpack.c.bf16 %v1262_v35, %v1259_v42  ;;  %v1101_v51 = vadd.f32 %v1100_v39, %v1027_v36 }
 0x1c9   :  { %v1029_v43 = vpop.f32.mrf.mxu0  ;;  %v1102_v44 = vpop.f32.mrf.mxu1 }
 0x1ca   :  { %v1284_v45 = vpack.c.bf16 %v1263_v41, %v1260_v40  ;;  %v1103_v49 = vadd.f32 %v1102_v44, %v1029_v43  ;;  %v1265_v60 = vmax.f32 %v1101_v51, 0.0 }
 0x1cb   :  { %v1031_v47 = vpop.f32.mrf.mxu0  ;;  %v1104_v48 = vpop.f32.mrf.mxu1 }
 0x1cc   :  { %v1105_v50 = vadd.f32 %v1104_v48, %v1031_v47  ;;  %1519 = vmatprep.mubr.bf16.mxu0 %v1284_v45  ;;  %v1266_v58 = vmax.f32 %v1103_v49, 0.0 }
 0x1cd   :  { %v1033_v52 = vpop.f32.mrf.mxu0  ;;  %v1106_v53 = vpop.f32.mrf.mxu1  ;;  %1520 = vmatmul.mubr.bf16.vlgmr.msra.gmra.mxu0 %v1283_v46 }
 0x1ce   :  { %v1107_v54 = vadd.f32 %v1106_v53, %v1033_v52  ;;  %v1268_v55 = vmax.f32 %v1105_v50, 0.0 }
 0x1cf   :  { %v1037_v56 = vpop.f32.mrf.mxu0  ;;  %v1110_v57 = vpop.f32.mrf.mxu1 }
 0x1d0   :  { %v1269_v59 = vmax.f32 %v1107_v54, 0.0  ;;  %v1286_v4 = vpack.c.bf16 %v1268_v55, %v1265_v60  ;;  %v1111_v34 = vadd.f32 %v1110_v57, %v1037_v56 }
 0x1d1   :  { %v1039_v63 = vpop.f32.mrf.mxu0  ;;  %v1112_v0 = vpop.f32.mrf.mxu1 }
 0x1d2   :  { %v1287_v3 = vpack.c.bf16 %v1269_v59, %v1266_v58  ;;  %v1113_v7 = vadd.f32 %v1112_v0, %v1039_v63  ;;  %v1271_v10 = vmax.f32 %v1111_v34, 0.0 }
 0x1d3   :  { %v1041_v5 = vpop.f32.mrf.mxu0  ;;  %v1114_v6 = vpop.f32.mrf.mxu1 }
 0x1d4   :  { %v1115_v33 = vadd.f32 %v1114_v6, %v1041_v5  ;;  %1527 = vmatprep.mubr.bf16.mxu0 %v1287_v3  ;;  %v1272_v1 = vmax.f32 %v1113_v7, 0.0 }
 0x1d5   :  { %v1043_v8 = vpop.f32.mrf.mxu0  ;;  %v1116_v9 = vpop.f32.mrf.mxu1  ;;  %1528 = vmatmul.mubr.bf16.gmra.mxu0 %v1286_v4 }
 0x1d6   :  { %v1117_v37 = vadd.f32 %v1116_v9, %v1043_v8  ;;  %v1274_v38 = vmax.f32 %v1115_v33, 0.0 }
 0x1d7   :  { %v1047_v61 = vpop.f32.mrf.mxu0  ;;  %v1120_v62 = vpop.f32.mrf.mxu1 }
 0x1d8   :  { %v1275_v2 = vmax.f32 %v1117_v37, 0.0  ;;  %v1289_v14 = vpack.c.bf16 %v1274_v38, %v1271_v10  ;;  %v1121_v19 = vadd.f32 %v1120_v62, %v1047_v61 }
 0x1d9   :  { %v1049_v11 = vpop.f32.mrf.mxu0  ;;  %v1122_v12 = vpop.f32.mrf.mxu1 }
 0x1da   :  { %v1290_v13 = vpack.c.bf16 %v1275_v2, %v1272_v1  ;;  %v1123_v17 = vadd.f32 %v1122_v12, %v1049_v11  ;;  %v1277_v28 = vmax.f32 %v1121_v19, 0.0 }
 0x1db   :  { %v1051_v15 = vpop.f32.mrf.mxu0  ;;  %v1124_v16 = vpop.f32.mrf.mxu1 }
 0x1dc   :  { %v1125_v18 = vadd.f32 %v1124_v16, %v1051_v15  ;;  %1535 = vmatprep.mubr.bf16.mxu0 %v1290_v13  ;;  %v1278_v26 = vmax.f32 %v1123_v17, 0.0 }
 0x1dd   :  { %v1053_v20 = vpop.f32.mrf.mxu0  ;;  %v1126_v21 = vpop.f32.mrf.mxu1  ;;  %1536 = vmatmul.mubr.bf16.gmra.mxu0 %v1289_v14 }
 0x1de   :  { %v1127_v22 = vadd.f32 %v1126_v21, %v1053_v20  ;;  %v1280_v23 = vmax.f32 %v1125_v18, 0.0 }
 0x1df   :  { %v1807_v24 = vpop.f32.mrf.mxu0  ;;  %v1847_v25 = vpop.f32.mrf.mxu1 }
 0x1e0   :  { %v1281_v27 = vmax.f32 %v1127_v22, 0.0  ;;  %v1292_v36 = vpack.c.bf16 %v1280_v23, %v1277_v28 }
 0x1e1   :  { %v1808_v29 = vpop.f32.mrf.mxu0  ;;  %v1848_v30 = vpop.f32.mrf.mxu1 }
 0x1e2   :  { %v1293_v31 = vpack.c.bf16 %v1281_v27, %v1278_v26  ;;  %v1809_v32 = vadd.f32 %v1808_v29, %v1807_v24  ;;  %v1849_v35 = vadd.f32 %v1848_v30, %v1847_v25 }
 0x1e3   :  { %v1810_v39 = vpop.f32.mrf.mxu0  ;;  %v1850_v40 = vpop.f32.mrf.mxu1 }
 0x1e4   :  { %1543 = vmatprep.mubr.bf16.mxu0 %v1293_v31  ;;  %v1229_v43 = vadd.f32 %v1849_v35, %v1809_v32 }
 0x1e5   :  { %v1811_v41 = vpop.f32.mrf.mxu0  ;;  %v1851_v42 = vpop.f32.mrf.mxu1  ;;  %1544 = vmatmul.mubr.bf16.gmra.mxu0 %v1292_v36 }
 0x1e6   :  { %v1812_v44 = vadd.f32 %v1811_v41, %v1810_v39  ;;  %v1852_v45 = vadd.f32 %v1851_v42, %v1850_v40  ;;  %v1261_v51 = vmax.f32 %v1229_v43, 0.0 }
 0x1e7   :  { %v1813_v46 = vpop.f32.mrf.mxu0  ;;  %v1853_v47 = vpop.f32.mrf.mxu1 }
 0x1e8   :  { %v1232_v48 = vadd.f32 %v1852_v45, %v1812_v44 }
 0x1e9   :  { %v1814_v49 = vpop.f32.mrf.mxu0  ;;  %v1854_v50 = vpop.f32.mrf.mxu1 }
 0x1ea   :  { %v1264_v52 = vmax.f32 %v1232_v48, 0.0  ;;  %v1815_v53 = vadd.f32 %v1814_v49, %v1813_v46  ;;  %v1855_v54 = vadd.f32 %v1854_v50, %v1853_v47 }
 0x1eb   :  { %v1816_v55 = vpop.f32.mrf.mxu0  ;;  %v1856_v56 = vpop.f32.mrf.mxu1 }
 0x1ec   :  { %v1285_v57 = vpack.c.bf16 %v1264_v52, %v1261_v51  ;;  %v1237_v60 = vadd.f32 %v1855_v54, %v1815_v53 }
 0x1ed   :  { %v1817_v58 = vpop.f32.mrf.mxu0  ;;  %v1857_v59 = vpop.f32.mrf.mxu1 }
 0x1ee   :  { %v1818_v63 = vadd.f32 %v1817_v58, %v1816_v55  ;;  %v1858_v0 = vadd.f32 %v1857_v59, %v1856_v56  ;;  %1939 = vmatprep.mubr.bf16.mxu1 %v1285_v57  ;;  %v1267_v33 = vmax.f32 %v1237_v60, 0.0 }
 0x1ef   :  { %v1819_v3 = vpop.f32.mrf.mxu0  ;;  %v1859_v4 = vpop.f32.mrf.mxu1 }
 0x1f0   :  { %v1240_v5 = vadd.f32 %v1858_v0, %v1818_v63 }
 0x1f1   :  { %v1820_v6 = vpop.f32.mrf.mxu0  ;;  %v1860_v7 = vpop.f32.mrf.mxu1 }
 0x1f2   :  { %v1270_v34 = vmax.f32 %v1240_v5, 0.0  ;;  %v1821_v8 = vadd.f32 %v1820_v6, %v1819_v3  ;;  %v1861_v9 = vadd.f32 %v1860_v7, %v1859_v4 }
 0x1f3   :  { %v1822_v37 = vpop.f32.mrf.mxu0  ;;  %v1862_v38 = vpop.f32.mrf.mxu1 }
 0x1f4   :  { %v1288_v61 = vpack.c.bf16 %v1270_v34, %v1267_v33  ;;  %v1245_v2 = vadd.f32 %v1861_v9, %v1821_v8 }
 0x1f5   :  { %v1823_v62 = vpop.f32.mrf.mxu0  ;;  %v1863_v1 = vpop.f32.mrf.mxu1 }
 0x1f6   :  { %v1824_v10 = vadd.f32 %v1823_v62, %v1822_v37  ;;  %v1864_v11 = vadd.f32 %v1863_v1, %v1862_v38  ;;  %1940 = vmatmul.mubr.bf16.vlgmr.msra.gmra.mxu1 %v1288_v61  ;;  %v1273_v17 = vmax.f32 %v1245_v2, 0.0 }
 0x1f7   :  { %v1825_v12 = vpop.f32.mrf.mxu0  ;;  %v1865_v13 = vpop.f32.mrf.mxu1 }
 0x1f8   :  { %v1248_v14 = vadd.f32 %v1864_v11, %v1824_v10 }
 0x1f9   :  { %v1826_v15 = vpop.f32.mrf.mxu0  ;;  %v1866_v16 = vpop.f32.mrf.mxu1 }
 0x1fa   :  { %v1276_v18 = vmax.f32 %v1248_v14, 0.0  ;;  %v1827_v19 = vadd.f32 %v1826_v15, %v1825_v12  ;;  %v1867_v20 = vadd.f32 %v1866_v16, %v1865_v13 }
 0x1fb   :  { %v1828_v21 = vpop.f32.mrf.mxu0  ;;  %v1868_v22 = vpop.f32.mrf.mxu1 }
 0x1fc   :  { %v1291_v23 = vpack.c.bf16 %v1276_v18, %v1273_v17  ;;  %v1253_v26 = vadd.f32 %v1867_v20, %v1827_v19 }
 0x1fd   :  { %v1829_v24 = vpop.f32.mrf.mxu0  ;;  %v1869_v25 = vpop.f32.mrf.mxu1 }
 0x1fe   :  { %v1830_v27 = vadd.f32 %v1829_v24, %v1828_v21  ;;  %v1870_v28 = vadd.f32 %v1869_v25, %v1868_v22  ;;  %1943 = vmatprep.mubr.bf16.mxu1 %v1291_v23  ;;  %v1279_v30 = vmax.f32 %v1253_v26, 0.0 }
 0x200   :  { %v1256_v29 = vadd.f32 %v1870_v28, %v1830_v27 }
 0x202   :  { %v1282_v31 = vmax.f32 %v1256_v29, 0.0 }
 0x204   :  { %v1294_v32 = vpack.c.bf16 %v1282_v31, %v1279_v30 }
 0x206   :  { %1944 = vmatmul.mubr.bf16.gmra.mxu1 %v1294_v32 }
 0x28d   :  { %v1887_v35 = vpop.f32.mrf.mxu0 }
 0x28f   :  { %v1888_v36 = vpop.f32.mrf.mxu0 }
 0x290   :  { %v1889_v51 = vadd.f32 %v1888_v36, %v1887_v35 }
 0x291   :  { %v1890_v39 = vpop.f32.mrf.mxu0 }
 0x293   :  { %v1891_v40 = vpop.f32.mrf.mxu0 }
 0x294   :  { %v1892_v58 = vadd.f32 %v1891_v40, %v1890_v39 }
 0x295   :  { %v1893_v41 = vpop.f32.mrf.mxu0 }
 0x297   :  { %v1894_v42 = vpop.f32.mrf.mxu0 }
 0x298   :  { %v1895_v48 = vadd.f32 %v1894_v42, %v1893_v41 }
 0x299   :  { %v1896_v43 = vpop.f32.mrf.mxu0 }
 0x29b   :  { %v1897_v44 = vpop.f32.mrf.mxu0 }
 0x29c   :  { %v1898_v54 = vadd.f32 %v1897_v44, %v1896_v43 }
 0x29d   :  { %v1899_v45 = vpop.f32.mrf.mxu0 }
 0x29f   :  { %v1900_v46 = vpop.f32.mrf.mxu0 }
 0x2a0   :  { %v1901_v33 = vadd.f32 %v1900_v46, %v1899_v45 }
 0x2a1   :  { %v1902_v47 = vpop.f32.mrf.mxu0 }
 0x2a3   :  { %v1903_v49 = vpop.f32.mrf.mxu0 }
 0x2a4   :  { %v1904_v1 = vadd.f32 %v1903_v49, %v1902_v47 }
 0x2a5   :  { %v1905_v56 = vpop.f32.mrf.mxu0 }
 0x2a7   :  { %v1906_v0 = vpop.f32.mrf.mxu0 }
 0x2a8   :  { %v1907_v4 = vadd.f32 %v1906_v0, %v1905_v56 }
 0x2a9   :  { %v1908_v3 = vpop.f32.mrf.mxu0 }
 0x2ab   :  { %v1909_v6 = vpop.f32.mrf.mxu0 }
 0x2ac   :  { %v1910_v37 = vadd.f32 %v1909_v6, %v1908_v3 }
 0x2b6   :  { %v1941_v50 = vpop.f32.mrf.mxu1 }
 0x2b7   :  { %v1595_v52 = vadd.f32 %v1941_v50, %v1895_v48 }
 0x2b8   :  { %v1586_v53 = vpop.f32.mrf.mxu1 }
 0x2b9   :  { %2128 = vtanh.f32 %v1595_v52  ;;  %v1587_v55 = vadd.f32 %v1889_v51, %v1586_v53 }
 0x2ba   :  { %v1942_v57 = vpop.f32.mrf.mxu1 }
 0x2bb   :  { %2130 = vtanh.f32 %v1587_v55  ;;  %v1598_v59 = vadd.f32 %v1942_v57, %v1898_v54 }
 0x2bc   :  { %v1589_v60 = vpop.f32.mrf.mxu1 }
 0x2bd   :  { %2132 = vtanh.f32 %v1598_v59  ;;  %v1590_v63 = vadd.f32 %v1892_v58, %v1589_v60 }
 0x2bf   :  { %2134 = vtanh.f32 %v1590_v63 }
 0x2c6   :  { %v2129_v5 = vpop.eup %2128  ;;  %v1945_v7 = vpop.f32.mrf.mxu1 }
 0x2c7   :  { %1627 = vst [vmem:[#allocation8 + $0x10] sm:$0xff] %v2129_v5  ;;  %v1611_v34 = vadd.f32 %v1945_v7, %v1907_v4 }
 0x2c8   :  { %v2131_v8 = vpop.eup %2130  ;;  %v1602_v9 = vpop.f32.mrf.mxu1 }
 0x2c9   :  { %1625 = vst [vmem:[#allocation8] sm:$0xff] %v2131_v8  ;;  %2136 = vtanh.f32 %v1611_v34  ;;  %v1603_v38 = vadd.f32 %v1901_v33, %v1602_v9 }
 0x2ca   :  { %v2133_v61 = vpop.eup %2132  ;;  %v1946_v62 = vpop.f32.mrf.mxu1 }
 0x2cb   :  { %1628 = vst [vmem:[#allocation8 + $0x18] sm:$0xff] %v2133_v61  ;;  %2138 = vtanh.f32 %v1603_v38  ;;  %v1614_v2 = vadd.f32 %v1946_v62, %v1910_v37 }
 0x2cc   :  { %v2135_v10 = vpop.eup %2134  ;;  %v1605_v11 = vpop.f32.mrf.mxu1 }
 0x2cd   :  { %1626 = vst [vmem:[#allocation8 + $0x8] sm:$0xff] %v2135_v10  ;;  %2140 = vtanh.f32 %v1614_v2  ;;  %v1606_v12 = vadd.f32 %v1904_v1, %v1605_v11 }
 0x2cf   :  { %2142 = vtanh.f32 %v1606_v12 }
 0x2d6   :  { %v2137_v13 = vpop.eup %2136 }
 0x2d7   :  { %1631 = vst [vmem:[#allocation8 + $0x30] sm:$0xff] %v2137_v13 }
 0x2d8   :  { %v2139_v14 = vpop.eup %2138 }
 0x2d9   :  { %1629 = vst [vmem:[#allocation8 + $0x20] sm:$0xff] %v2139_v14 }
 0x2da   :  { %v2141_v15 = vpop.eup %2140 }
 0x2db   :  { %1632 = vst [vmem:[#allocation8 + $0x38] sm:$0xff] %v2141_v15 }
 0x2dc   :  { %v2143_v16 = vpop.eup %2142 }
 0x2dd   :  { %1630 = vst [vmem:[#allocation8 + $0x28] sm:$0xff] %v2143_v16 }
 0x2de   :  { %2215 = shalt.err (!%p2212_p5)
}
 0x2df   :  { %s2241_s17 = smov 128   ;;  %s2242_s18 = smov 8  }
 0x2e0   :  { %1644 = dma.vmem_to_hbm [thread:$0]  %s1639_s15, 1024, %s2360_s4, [#allocation4], %s2241_s17, %s2241_s17, %s2242_s18  }
 0x2e1   :  { %2228 = dma.done.wait [#allocation4], 1024  }
 0x2e2   :  { %2229 = vsyncadd [#allocation4], 4294966272 }
 0x2e3   :  { %1648 = vsyncpa [#allocation3], 1 }
 0x2e4   :  { %1649 = vsyncpa [#allocation6], 1 }
 0x2e5   :  { %1650 = vsyncpa [#allocation4], 1 }

</bundles_post_ra>
